<compile_context>
chip_gen: v6e
topology: v6e:2x2x1
jax: 0.10.0
libtpu: 0.0.40
codegen_flags: <defaults>
</compile_context>

<pallas_src>
import math

import jax
import jax.numpy as jnp
from jax.experimental import pallas as pl
from jax.experimental.pallas import tpu as pltpu


def _round_up(x: int, m: int) -> int:
    return ((x + m - 1) // m) * m


def _round_down(x: int, m: int) -> int:
    return (x // m) * m


def _tpu_vmem_capacity_bytes() -> int:
    """Physical VMEM per TensorCore; conservative default if unavailable."""
    try:
        return int(pltpu.get_tpu_info().vmem_capacity_bytes)
    except Exception:
        return 64 << 20  # v7x-like conservative default


def _w_block_spec(d: int, tn: int, buffer_count=None) -> pl.BlockSpec:
    """W tile spec: depends only on the slow (column) grid axis, so each W tile
    is fetched once.  Optionally request deeper pipelining (v5e/v6e)."""
    index_map = lambda j, i: (0, j)
    if buffer_count is not None and buffer_count > 2:
        try:
            return pl.BlockSpec((d, tn), index_map,
                                pipeline_mode=pl.Buffered(buffer_count))
        except TypeError:
            # older jax without pipeline_mode kwarg -> default double-buffering
            pass
    return pl.BlockSpec((d, tn), index_map)


def _make_random_layer_kernel(n_inputs: int):
    """Kernel over refs: (x_0..x_{n-1}, w_0..w_{n-1}, out).

    The 1/N**(1/n) scale is already folded into W_0 at prepare time, so the
    body is purely matmuls + elementwise products."""

    def kernel(*refs):
        x_refs = refs[:n_inputs]
        w_refs = refs[n_inputs:2 * n_inputs]
        o_ref = refs[2 * n_inputs]

        acc = jnp.dot(x_refs[0][...], w_refs[0][...],
                      preferred_element_type=jnp.float32)
        for i in range(1, n_inputs):
            acc = acc * jnp.dot(x_refs[i][...], w_refs[i][...],
                                preferred_element_type=jnp.float32)
        o_ref[...] = acc.astype(o_ref.dtype)

    return kernel


class RandomLayerPallas:
    """JAX/Pallas equivalent of the PyTorch RandomLayer module."""

    def __init__(self, input_dim_list, output_dim=1024, *, random_matrices=None,
                 key=None, compute_dtype=jnp.bfloat16, out_dtype=jnp.float32,
                 tile_n=None, tile_m=None):
        self.input_num = len(input_dim_list)
        assert self.input_num >= 1
        self.in_dims = [int(d) for d in input_dim_list]
        self.output_dim = int(output_dim)
        self.compute_dtype = jnp.dtype(compute_dtype)
        self.out_dtype = jnp.dtype(out_dtype)

        n = self.input_num
        N = self.output_dim

        # Parameters (f32, PyTorch-equivalent torch.randn(d_i, N)).
        if random_matrices is None:
            if key is None:
                key = jax.random.PRNGKey(0)
            keys = jax.random.split(key, n)
            random_matrices = [
                jax.random.normal(keys[i], (self.in_dims[i], N), dtype=jnp.float32)
                for i in range(n)]
        assert len(random_matrices) == n
        for w, d in zip(random_matrices, self.in_dims):
            assert w.shape == (d, N), f"bad random-matrix shape {w.shape}"
        self.random_matrix = list(random_matrices)

        # ---- generation-aware tiling / VMEM policy --------------------------
        vmem = _tpu_vmem_capacity_bytes()
        self._vmem_bytes = vmem
        big_vmem = vmem >= (100 << 20)          # v5e / v6e (128 MiB physical)
        self._maybe_two_cores = not big_vmem    # v7x-like: 2 TCs share the grid
        self._vmem_budget = int(vmem * 3 // 4)  # ~96 MiB (v5e/v6e) / ~48 MiB (v7x)
        self._tn_cap = 1024 if big_vmem else 512
        self._tm_cap = 512 if big_vmem else 256
        self._row_mult = 16 if self.compute_dtype == jnp.dtype(jnp.bfloat16) else 8
        self._w_buffers = 3 if big_vmem else 2  # deeper W pipelining on v5e/v6e
        self._tile_m_override = tile_m

        if tile_n is not None:
            tn = int(tile_n)
            assert tn % 128 == 0, "tile_n must be a multiple of 128"
        else:
            tn = min(self._tn_cap, _round_up(N, 128))
        self._tn = tn
        self.N_pad = _round_up(N, tn)

        # ---- prepare W ONCE: fold scale into W_0, cast, pad ------------------
        # (hoisted out of forward — this was the largest per-call HBM cost)
        scale = 1.0 / math.pow(float(N), 1.0 / n)
        self.scale = scale
        ws = []
        for i, w in enumerate(self.random_matrix):
            w = jnp.asarray(w, jnp.float32)
            if i == 0:
                w = w * jnp.float32(scale)
            w = w.astype(self.compute_dtype)
            if self.N_pad != N:
                w = jnp.pad(w, ((0, 0), (0, self.N_pad - N)))
            ws.append(w)
        self._ws_prepared = [jax.block_until_ready(w) for w in ws]

        self._kernel = _make_random_layer_kernel(n)

    # -------------------------------------------------------------------------
    def __call__(self, input_list):
        return self.forward(input_list)

    def forward(self, input_list):
        n = self.input_num
        assert len(input_list) == n
        B = int(input_list[0].shape[0])
        N, N_pad = self.output_dim, self.N_pad
        in_dims = self.in_dims
        c_item = self.compute_dtype.itemsize
        o_item = self.out_dtype.itemsize
        row_mult = self._row_mult

        for x, d in zip(input_list, in_dims):
            assert x.shape == (B, d), f"bad input shape {x.shape}"

        # ---- tile_m (batch tile), bounded + VMEM-fit shrink -------------------
        if self._tile_m_override is not None:
            tm = int(self._tile_m_override)
            assert tm % row_mult == 0, f"tile_m must be a multiple of {row_mult}"
        else:
            tm = min(_round_up(B, row_mult), self._tm_cap)

        w_buffers = self._w_buffers

        def footprint(tm_, tn_):
            b = 0
            for d in in_dims:
                b += 2 * tm_ * d * c_item          # x tiles, double-buffered
                b += w_buffers * d * tn_ * c_item  # W tiles
            b += 2 * tm_ * tn_ * o_item            # out tile, double-buffered
            return b

        tn = self._tn
        while footprint(tm, tn) > self._vmem_budget and tm > row_mult:
            tm = max(row_mult, _round_down(tm // 2, row_mult))
        while (footprint(tm, tn) > self._vmem_budget
               and tn > 128 and tn % 256 == 0):
            tn //= 2

        B_pad = _round_up(B, tm)
        m_blocks = B_pad // tm
        n_blocks = N_pad // tn

        # ---- v7x: guarantee >= 2 parallel grid steps so both TCs get work ----
        if self._maybe_two_cores and m_blocks * n_blocks < 2:
            if tn % 256 == 0:                       # split columns (keeps 128-mult)
                tn //= 2
                n_blocks = N_pad // tn
            elif tm > row_mult and B > _round_down(tm // 2, row_mult):
                tm = max(row_mult, _round_down(tm // 2, row_mult))
                B_pad = _round_up(B, tm)
                m_blocks = B_pad // tm

        # ---- pad + cast activations (W side already prepared in __init__) ----
        xs = []
        for x in input_list:
            x = jnp.asarray(x).astype(self.compute_dtype)
            if B_pad != B:
                x = jnp.pad(x, ((0, B_pad - B), (0, 0)))
            xs.append(x)

        # ---- grid & specs: column blocks slow, batch blocks fast --------------
        # => each W tile (the big operand) is DMA'd exactly once; only the small
        #    [tm, d_i] x tiles re-stream along the inner axis.
        grid = (n_blocks, m_blocks)
        x_specs = [pl.BlockSpec((tm, d), lambda j, i: (i, 0)) for d in in_dims]
        use_deep_w = (w_buffers > 2) and (n_blocks > 1)
        w_specs = [_w_block_spec(d, tn, w_buffers if use_deep_w else None)
                   for d in in_dims]
        out_spec = pl.BlockSpec((tm, tn), lambda j, i: (i, j))

        # ---- VMEM limit / cost estimate ---------------------------------------
        vmem_limit = int(footprint(tm, tn) * 5 // 4) + (2 << 20)
        vmem_limit = max(vmem_limit, 16 << 20)
        vmem_limit = min(vmem_limit, max(self._vmem_budget, 16 << 20))

        flops = sum(2 * B_pad * d * N_pad for d in in_dims) + (n - 1) * B_pad * N_pad
        bytes_accessed = (
            sum(d * N_pad * c_item for d in in_dims)                 # W streamed once
            + n_blocks * sum(B_pad * d * c_item for d in in_dims)    # x per column block
            + B_pad * N_pad * o_item)                                # output written once
        cost = pl.CostEstimate(flops=int(flops), transcendentals=0,
                               bytes_accessed=int(bytes_accessed))

        fn = pl.pallas_call(
            self._kernel,
            out_shape=jax.ShapeDtypeStruct((B_pad, N_pad), self.out_dtype),
            grid_spec=pltpu.PrefetchScalarGridSpec(
                num_scalar_prefetch=0,
                grid=grid,
                in_specs=x_specs + w_specs,
                out_specs=out_spec,
            ),
            compiler_params=pltpu.CompilerParams(
                dimension_semantics=("parallel", "parallel"),
                vmem_limit_bytes=vmem_limit,
            ),
            cost_estimate=cost,
        )
        out = fn(*xs, *self._ws_prepared)

        if B_pad != B or N_pad != N:
            out = out[:B, :N]
        return out


# ------------------------------ references ------------------------------------
def random_layer_reference(input_list, random_matrices, output_dim,
                           compute_dtype=None):
    """Plain-JAX reference mirroring the PyTorch forward.

    compute_dtype=jnp.bfloat16 reproduces the kernel numerics (scale folded into
    W_0, bf16 operands, f32 accumulation) for tight tolerance checks."""
    n = len(input_list)
    scale = 1.0 / math.pow(float(output_dim), 1.0 / n)
    if compute_dtype is None:
        projs = [jnp.dot(x, w, preferred_element_type=jnp.float32)
                 for x, w in zip(input_list, random_matrices)]
        out = projs[0] * jnp.float32(scale)
    else:
        ws = [w * jnp.float32(scale) if i == 0 else w
              for i, w in enumerate(random_matrices)]
        projs = [jnp.dot(x.astype(compute_dtype), w.astype(compute_dtype),
                         preferred_element_type=jnp.float32)
                 for x, w in zip(input_list, ws)]
        out = projs[0]
    for p in projs[1:]:
        out = out * p
    return out


def _run_case(key, B, input_dim_list, output_dim):
    keys = jax.random.split(key, 2 * len(input_dim_list))
    inputs = [jax.random.normal(keys[2 * i], (B, d), dtype=jnp.float32)
              for i, d in enumerate(input_dim_list)]
    mats = [jax.random.normal(keys[2 * i + 1], (d, output_dim), dtype=jnp.float32)
            for i, d in enumerate(input_dim_list)]

    layer = RandomLayerPallas(input_dim_list, output_dim, random_matrices=mats)
    out = jax.block_until_ready(layer(inputs))
    assert out.shape == (B, output_dim)

    # Tight check against a bf16-consistent (scale-folded) reference.
    ref_bf16 = random_layer_reference(inputs, mats, output_dim,
                                      compute_dtype=jnp.bfloat16)
    assert jnp.allclose(out, ref_bf16, rtol=1e-2, atol=1e-2), \
        "mismatch vs bf16-consistent reference"

    # Loose sanity check against the full-f32 PyTorch-equivalent reference.
    ref_f32 = random_layer_reference(inputs, mats, output_dim)
    assert jnp.allclose(out, ref_f32, rtol=5e-2, atol=5e-2), \
        "mismatch vs f32 reference"


if __name__ == "__main__":
    key = jax.random.PRNGKey(0)
    k0, k1 = jax.random.split(key)

    # Case 1: canonical CDAN use (two feature streams), N=1024.
    _run_case(k0, B=8, input_dim_list=[32, 16], output_dim=1024)

    # Case 2: ragged sizes (batch not a multiple of 16, output_dim not a
    # multiple of 128) exercising the zero-pad + slice path.
    _run_case(k1, B=10, input_dim_list=[32, 16], output_dim=200)

    print("KERNEL_OK")
</pallas_src>

<mosaic_0001>
module attributes {stable_mosaic.version = 11 : i64} {
  func.func @kernel(%arg0: i32, %arg1: i32, %arg2: memref<16x32xbf16, #tpu.memory_space<vmem>>, %arg3: memref<16x16xbf16, #tpu.memory_space<vmem>>, %arg4: memref<32x512xbf16, #tpu.memory_space<vmem>>, %arg5: memref<16x512xbf16, #tpu.memory_space<vmem>>, %arg6: memref<16x512xf32, #tpu.memory_space<vmem>>) attributes {dimension_semantics = [#tpu.dimension_semantics<parallel>, #tpu.dimension_semantics<parallel>], iteration_bounds = array<i64: 2, 1>, scalar_prefetch = 0 : i64, scratch_operands = 0 : i64, tpu.core_type = #tpu.core_type<tc>, window_params = [{transform_indices = @transform_0, window_bounds = array<i64: 16, 32>}, {transform_indices = @transform_1, window_bounds = array<i64: 16, 16>}, {transform_indices = @transform_2, window_bounds = array<i64: 32, 512>}, {transform_indices = @transform_3, window_bounds = array<i64: 16, 512>}, {transform_indices = @transform_4, window_bounds = array<i64: 16, 512>}]} {
    %c0 = arith.constant 0 : index
    %c0_0 = arith.constant 0 : index
    %0 = vector.load %arg2[%c0, %c0_0] : memref<16x32xbf16, #tpu.memory_space<vmem>>, vector<16x32xbf16>
    %c0_1 = arith.constant 0 : index
    %c0_2 = arith.constant 0 : index
    %1 = vector.load %arg4[%c0_1, %c0_2] : memref<32x512xbf16, #tpu.memory_space<vmem>>, vector<32x512xbf16>
    %cst = arith.constant dense<0.000000e+00> : vector<16x512xf32>
    %2 = tpu.matmul %0, %1, %cst {dimension_numbers = #tpu.dot_dimension_numbers<[1], [0], [0], [1], [0, 0, 1, 1], [], []>} : vector<16x32xbf16>, vector<32x512xbf16>, vector<16x512xf32> -> vector<16x512xf32>
    %c0_3 = arith.constant 0 : index
    %c0_4 = arith.constant 0 : index
    %3 = vector.load %arg3[%c0_3, %c0_4] : memref<16x16xbf16, #tpu.memory_space<vmem>>, vector<16x16xbf16>
    %c0_5 = arith.constant 0 : index
    %c0_6 = arith.constant 0 : index
    %4 = vector.load %arg5[%c0_5, %c0_6] : memref<16x512xbf16, #tpu.memory_space<vmem>>, vector<16x512xbf16>
    %cst_7 = arith.constant dense<0.000000e+00> : vector<16x512xf32>
    %5 = tpu.matmul %3, %4, %cst_7 {dimension_numbers = #tpu.dot_dimension_numbers<[1], [0], [0], [1], [0, 0, 1, 1], [], []>} : vector<16x16xbf16>, vector<16x512xbf16>, vector<16x512xf32> -> vector<16x512xf32>
    %6 = arith.mulf %2, %5 : vector<16x512xf32>
    %c0_8 = arith.constant 0 : index
    %c0_9 = arith.constant 0 : index
    %7 = vector.load %arg6[%c0_8, %c0_9] : memref<16x512xf32, #tpu.memory_space<vmem>>, vector<16x512xf32>
    tpu.vector_store %arg6[%c0_8, %c0_9], %6 {strides = array<i32>} : memref<16x512xf32, #tpu.memory_space<vmem>>, vector<16x512xf32>,
    return
  }
  func.func @transform_0(%arg0: i32, %arg1: i32) -> (i32, i32) {
    %c0_i32 = arith.constant 0 : i32
    %c0_i32_0 = arith.constant 0 : i32
    return %arg1, %c0_i32 : i32, i32
  }
  func.func @transform_1(%arg0: i32, %arg1: i32) -> (i32, i32) {
    %c0_i32 = arith.constant 0 : i32
    %c0_i32_0 = arith.constant 0 : i32
    return %arg1, %c0_i32 : i32, i32
  }
  func.func @transform_2(%arg0: i32, %arg1: i32) -> (i32, i32) {
    %c0_i32 = arith.constant 0 : i32
    %c0_i32_0 = arith.constant 0 : i32
    return %c0_i32, %arg0 : i32, i32
  }
  func.func @transform_3(%arg0: i32, %arg1: i32) -> (i32, i32) {
    %c0_i32 = arith.constant 0 : i32
    %c0_i32_0 = arith.constant 0 : i32
    return %c0_i32, %arg0 : i32, i32
  }
  func.func @transform_4(%arg0: i32, %arg1: i32) -> (i32, i32) {
    %c0_i32 = arith.constant 0 : i32
    return %arg1, %arg0 : i32, i32
  }
}

</mosaic_0001>

<bundles_post_ra>
// kernel: tpu_custom_call.1
= control target key start
LH: loop header
LB: loop body
LE: loop exit
PB: predicated region body
PF: predicated region fallthrough
CT: control target
= control target key end

     0   :  { %s1380_s0 = inlined_call_operand.hbm [shape: bf16[16,32], index: 0, kind: input, shape index: {}]   ;;  %s1381_s1 = inlined_call_operand.hbm [shape: bf16[16,16], index: 1, kind: input, shape index: {}]   ;;  %s1382_s2 = inlined_call_operand.hbm [shape: bf16[32,1024], index: 2, kind: input, shape index: {}]   ;;  %s1383_s3 = inlined_call_operand.hbm [shape: bf16[16,1024], index: 3, kind: input, shape index: {}]   ;;  %s1384_s4 = inlined_call_operand.hbm [shape: f32[16,1024], index: 4, kind: output, shape index: {}]  }
   0x1   :  { %1394 = sst [smem:[#allocation16_spill]] %s1380_s0 }
   0x2   :  { %1395 = sst [smem:[#allocation17_spill]] %s1384_s4 }
   0x3   :  { %9 = vsyncpa [#allocation3], 0 }
   0x4   :  { %10 = vsyncpa [#allocation6], 0 }
   0x5   :  { %11 = vsyncpa [#allocation4], 0 }
   0x6   :  { %13 = vsyncpa [#allocation4 + $0x1], 0  ;;  %s1141_s15 = smov 0   ;;  %s1143_s16 = smov 0  }
   0x7   :  { %s1145_s17 = smov 0   ;;  %s1147_s18 = smov 0  }
   0x8   :  { %s1149_s19 = smov 0   ;;  %s1151_s20 = smov 0  }
   0x9 LB: > { %1396 = sst [smem:[#allocation14_spill]] %s1080_s15  ;;  %s1172_s21 = sadd.s32 4294967295, %s1100_s20   ;;  %s1100_s20 = sphi %s1151_s20, %s19_s20   ;;  %s1096_s19 = sphi %s1149_s19, %s1426_s19   ;;  %s1092_s18 = sphi %s1147_s18, %s1425_s18   ;;  %s1088_s17 = sphi %s1145_s17, %s1424_s17   ;;  %s1084_s16 = sphi %s1143_s16, %s1423_s16   ;;  %s1080_s15 = sphi %s1141_s15, %s1422_s15  }
   0xa   : > { %s744_s22 = sadd.s32 4294967294, %s1100_s20   ;;  %p97_p0 = scmp.ne.s32.totalorder %s1088_s17, %s1084_s16 }
   0xb   : > { %p98_p1 = scmp.eq.s32.totalorder %s1100_s20, 0  ;;  %p103_p2 = scmp.ne.s32.totalorder %s1084_s16, %s1080_s15 }
   0xc   : > { %p1385_p3 = scmp.eq.s32.totalorder %s1172_s21, 0  ;;  %p155_p4 = scmp.eq.s32.totalorder %s1172_s21, 1 }
   0xd   : > { %p1183_p5 = por %p98_p1, %p97_p0  ;;  %p161_p6 = scmp.eq.s32.totalorder %s744_s22, 1 }
   0xe   : > { %p1189_p7 = por %p1385_p3, %p103_p2  ;;  %p1193_p8 = por %p155_p4, %p97_p0 }
   0xf   : > { %p1197_p9 = por %p161_p6, %p103_p2  ;;  %p745_p10 = scmp.ge.s32.totalorder %s1100_s20, 1 }
  0x10   : > { %s1399_s26 = scalar_select %p1193_p8, 1, 0 }
  0x11   : > { %s1400_s27 = scalar_select %p1197_p9, 1, 0 }
  0x12   : > { %p168_p11 = scmp.lt.s32.totalorder %s1100_s20, 3  ;;  %s1102_s29 = smov [#allocation2]  }
  0x13   : > { %1401 = sst [smem:[#allocation15_spill]] %s1400_s27  ;;  %s183_s30 = sshll.u32 %s1102_s29, 4  ;;  %s184_s30 = int_to_ptr.vmem [resolvable:$true] %s183_s30 }
  0x14   : > { %p1203_p12 = pnand %p745_p10, %p168_p11  ;;  %p821_p1 = scmp.lt.s32.totalorder %s1100_s20, 2 }
  0x15   : > { %s31_s7 = sadd.s32 1, %s1096_s19  ;;  %s915_s9 = scalar_lea.vmem %s184_s30, 128 }
  0x16   : > { %p801_p13 = pneg %p1203_p12  ;;  %p1219_p2 = pnand %p821_p1, %p1183_p5 }
  0x17   : > { %p1224_p6 = scmp.ge.s32.totalorder %s31_s7, 2  ;;  %p916_p11 = scmp.ne.s32.totalorder %s184_s30, %s915_s9 }
  0x18   : > { %p1213_p4 = pnand %p801_p13, %p1385_p3  ;;  %p923_p3 = scmp.lt.s32.totalorder %s184_s30, %s184_s30 }
  0x19   : > { %p924_p9 = scmp.lt.s32.totalorder %s915_s9, %s915_s9 }
  0x1a   : > { %p906_p10 = pneg %p1213_p4 }
  0x1b   : > { %p925_p8 = por %p924_p9, %p923_p3 }
  0x1c   : > { %p918_p13 = pnand %p916_p11, %p906_p10 }
  0x1e   : > { %p919_p0 = pneg %p918_p13 }
  0x20   : > { %p926_p5 = pnand %p925_p8, %p919_p0 }
  0x22   : > { %929 = shalt.err (!%p926_p5)
}
  0x23   : > { %s1390_s10 = smov 64   ;;  %s1104_s11 = smov 4  }
  0x24   : > { %s1406_s0 = sld [smem:[#allocation16_spill]]  ;;  %s213_s14 = sand.u32 1, %s1100_s20  }
  0x25   : > { %s1428_s7 = smov (%p1224_p6, %s31_s7), 0  ;;  %s215_s22 = sand.u32 1, %s1088_s17  }
  0x26   : > { %s87_s24 = ssub.s32 %s1096_s19, %s1428_s7  ;;  %s749_s29 = sshll.u32 %s215_s22, 6 }
  0x27   : > { %p88_p3 = scmp.eq.s32.totalorder %s87_s24, 0  ;;  %s784_s9 = sshll.u32 %s1096_s19, 8 }
  0x28   : > { %s217_s23 = scalar_lea.vmem [#allocation7], %s749_s29  ;;  %s1407_s15 = sadd.s32 1, %s1088_s17 }
  0x29   : > { %s224_s27 = sshll.u32 %s217_s23, 4  ;;  %s223_s8 = scalar_lea.hbm %s1382_s2, %s784_s9  ;;  %s225_s27 = int_to_ptr.vmem [resolvable:$true] %s224_s27 }
  0x2a   : > { %804 = dma.hbm_to_vmem [thread:$0]  (!%p1213_p4), %s1406_s0, 128, %s184_s30, [#allocation3], %s1390_s10, %s1390_s10, %s1104_s11  }
  0x2b   : > { %s1255_s4 = scalar_select %p88_p3, %s1088_s17, %s1407_s15  }
  0x2c   : > { %s1262_s13 = scalar_lea.sflag [#allocation3], %s213_s14  ;;  %p932_p8 = pneg %p1219_p2 }
  0x2d   : > { %s943_s10 = scalar_lea.vmem %s225_s27, 1024  ;;  %s1105_s23 = smov [#allocation7]  }
  0x2e   : > { %p944_p9 = scmp.ne.s32.totalorder %s225_s27, %s943_s10  ;;  %s948_s24 = sshll.u32 %s1105_s23, 4  ;;  %s949_s24 = int_to_ptr.vmem [resolvable:$false] %s948_s24 }
  0x2f   : > { %s950_s15 = scalar_lea.vmem %s949_s24, 2048  ;;  %p951_p6 = scmp.lt.s32.totalorder %s225_s27, %s949_s24 }
  0x30   : > { %p946_p0 = pnand %p944_p9, %p932_p8  ;;  %p952_p11 = scmp.lt.s32.totalorder %s950_s15, %s943_s10 }
  0x32   : > { %p947_p1 = pneg %p946_p0  ;;  %p953_p13 = por %p952_p11, %p951_p6 }
  0x34   : > { %p954_p5 = pnand %p953_p13, %p947_p1 }
  0x36   : > { %957 = shalt.err (!%p954_p5)
}
  0x37   : > { %s1391_s29 = smov 512   ;;  %s1392_s14 = smov 256  }
  0x38   : > { %s1393_s12 = smov 16   ;;  %s1109_s30 = smov [#allocation5]  }
  0x39   : > { %811 = dma.hbm_to_vmem [thread:$0]  (!%p1219_p2), %s223_s8, 1024, %s225_s27, %s1262_s13, %s1391_s29, %s1392_s14, %s1393_s12  }
  0x3a   : > { %s199_s23 = sshll.u32 %s1109_s30, 4  ;;  %s752_s24 = sshll.u32 %s215_s22, 5  ;;  %s200_s23 = int_to_ptr.vmem [resolvable:$true] %s199_s23 }
  0x3b   : > { %s969_s10 = scalar_lea.vmem %s200_s23, 128  ;;  %p977_p1 = scmp.lt.s32.totalorder %s200_s23, %s200_s23 }
  0x3c   : > { %p970_p3 = scmp.ne.s32.totalorder %s200_s23, %s969_s10  ;;  %p978_p6 = scmp.lt.s32.totalorder %s969_s10, %s969_s10 }
  0x3e   : > { %p972_p9 = pnand %p970_p3, %p906_p10  ;;  %p979_p11 = por %p978_p6, %p977_p1 }
  0x40   : > { %p973_p0 = pneg %p972_p9 }
  0x42   : > { %p980_p13 = pnand %p979_p11, %p973_p0 }
  0x44   : > { %983 = shalt.err (!%p980_p13)
}
  0x45   : > { %s1408_s27 = smov 64   ;;  %s244_s29 = scalar_lea.hbm %s1383_s3, %s784_s9 }
  0x46   : > { %807 = dma.hbm_to_vmem [thread:$0]  (!%p1213_p4), %s1381_s1, 128, %s200_s23, [#allocation6], %s1408_s27, %s1408_s27, %s1104_s11  }
  0x47   : > { %s238_s10 = scalar_lea.vmem [#allocation8], %s752_s24  ;;  %s1110_s5 = smov [#allocation8]  }
  0x48   : > { %s245_s14 = sshll.u32 %s238_s10, 4  ;;  %s1002_s0 = sshll.u32 %s1110_s5, 4  ;;  %s246_s14 = int_to_ptr.vmem [resolvable:$true] %s245_s14  ;;  %s1003_s0 = int_to_ptr.vmem [resolvable:$false] %s1002_s0 }
  0x49   : > { %s997_s12 = scalar_lea.vmem %s246_s14, 512  ;;  %s1004_s8 = scalar_lea.vmem %s1003_s0, 1024 }
  0x4a   : > { %p998_p10 = scmp.ne.s32.totalorder %s246_s14, %s997_s12  ;;  %p1005_p9 = scmp.lt.s32.totalorder %s246_s14, %s1003_s0 }
  0x4b   : > { %p1006_p4 = scmp.lt.s32.totalorder %s1004_s8, %s997_s12 }
  0x4c   : > { %p1000_p5 = pnand %p998_p10, %p932_p8 }
  0x4d   : > { %p1007_p0 = por %p1006_p4, %p1005_p9 }
  0x4e   : > { %p1001_p3 = pneg %p1000_p5 }
  0x50   : > { %p1008_p1 = pnand %p1007_p0, %p1001_p3 }
  0x52   : > { %1011 = shalt.err (!%p1008_p1)
}
  0x53   : > { %s1409_s11 = smov 16   ;;  %s1410_s9 = smov 256  }
  0x54   : > { %s1411_s23 = smov 512   ;;  %257 = sbr.rel (%p1203_p12) target bundleno = 332 (0x14c), region = 36 }
  0x55   : > { %814 = dma.hbm_to_vmem [thread:$0]  (!%p1219_p2), %s244_s29, 512, %s246_s14, %s1262_s13, %s1411_s23, %s1410_s9, %s1409_s11  }
  0x56   : > { %p1412_p8 = scmp.eq.s32.totalorder (!%p1203_p12), %s1172_s21, 0 }
  0x59   : > { %1063 = dma.done.wait (%p1412_p8), [#allocation3], 128   ;;  %p1413_p6 = pmov %p1412_p8 }
  0x5b   : > { %1065 = vsyncadd (%p1413_p6), [#allocation3], 4294967168  ;;  %p1414_p11 = pmov %p1413_p6 }
  0x5c   : > { %p1415_p13 = pmov %p1413_p6 }
  0x5d   : > { %1067 = dma.done.wait (%p1414_p11), [#allocation6], 128  }
  0x5e   : > { %1069 = vsyncadd (%p1415_p13), [#allocation6], 4294967168  ;;  %s267_s0 = sand.u32 1, %s1172_s21   ;;  %s1314_s6 = sand.u32 1, %s1084_s16  }
  0x5f   : > { %s758_s28 = sshll.u32 %s1314_s6, 6  ;;  %s268_s13 = scalar_lea.sflag [#allocation3], %s267_s0 }
  0x60   : > { %s271_s29 = scalar_lea.vmem [#allocation7], %s758_s28 }
  0x61   : > { %1071 = dma.done.wait (%p1189_p7), %s268_s13, 1536  }
  0x62   : > { %1073 = vsyncadd (%p1189_p7), %s268_s13, 4294965760  ;;  %v1111_v0 = vmov 0   ;;  %v884_v1 = vld [vmem:[%s271_s29 + $0x24] ss:$16 sps:$4 sm:$0xff]   ;;  %v886_v2 = vld [vmem:[%s271_s29 + $0x2c] ss:$16 sps:$4 sm:$0xff]  }
  0x63   : > { %408 = vmatprep.mubr.bf16.mxu0 %v1111_v0  ;;  %451 = vmatprep.mubr.bf16.mxu1 %v1111_v0  ;;  %s759_s21 = sshll.u32 %s1314_s6, 5  ;;  %v888_v3 = vld [vmem:[%s271_s29 + $0x20] ss:$16 sps:$4 sm:$0xff]   ;;  %v889_v4 = vld [vmem:[%s271_s29 + $0x28] ss:$16 sps:$4 sm:$0xff]   ;;  %vm372_vm0 = vcmask 261120  }
  0x64   : > { %388 = vmatprep.subr.bf16.mxu0 %v884_v1  ;;  %431 = vmatprep.subr.bf16.mxu1 %v886_v2  ;;  %v890_v5 = vld [vmem:[%s271_s29 + $0x4] ss:$16 sps:$4 sm:$0xff]   ;;  %v892_v6 = vld [vmem:[%s271_s29 + $0xc] ss:$16 sps:$4 sm:$0xff]   ;;  %v894_v7 = vld [vmem:[%s271_s29] ss:$16 sps:$4 sm:$0xff]  }
  0x65   : > { %389 = vmatpush1.bf16.msra.mxu0 %v888_v3  ;;  %432 = vmatpush1.bf16.msra.mxu1 %v889_v4  ;;  %v895_v8 = vld [vmem:[%s271_s29 + $0x8] ss:$16 sps:$4 sm:$0xff]   ;;  %v896_v9 = vld [vmem:[#allocation2] sm:$0xff]   ;;  %s280_s25 = scalar_lea.vmem [#allocation8], %s759_s21  ;;  %vm493_vm1 = vcmask 130048   ;;  %s309_s14 = scalar_lea.vmem [#allocation9], %s758_s28 }
  0x66   : > { %390 = vmatprep.subr.bf16.mxu0 %v890_v5  ;;  %433 = vmatprep.subr.bf16.mxu1 %v892_v6  ;;  %v897_v10 = vld [vmem:[%s280_s25] ss:$16 sps:$4 sm:$0xff]   ;;  %v899_v11 = vld [vmem:[%s280_s25 + $0x4] ss:$16 sps:$4 sm:$0xff]   ;;  %v900_v12 = vld [vmem:[%s280_s25 + $0x8] ss:$16 sps:$4 sm:$0xff]  }
  0x67   : > { %v902_v13 = vld [vmem:[%s280_s25 + $0xc] ss:$16 sps:$4 sm:$0xff]   ;;  %s616_s12 = sshll.u32 %s309_s14, 4  ;;  %s786_s24 = sshll.u32 %s1092_s18, 9  ;;  %s1327_s12 = int_to_ptr.vmem [resolvable:$true] %s616_s12 }
  0x68   : > { %v903_v14 = vld [vmem:[#allocation5] sm:$0xff]   ;;  %s1416_s22 = sld [smem:[#allocation17_spill]]  ;;  %s600_s18 = scalar_lea.sflag [#allocation4], %s1314_s6 }
  0x69   : > { %391 = vmatpush1.bf16.msra.mxu0 %v894_v7  ;;  %434 = vmatpush1.bf16.msra.mxu1 %v895_v8  ;;  %s1012_s10 = scalar_lea.vmem %s1327_s12, 1024  ;;  %p1417_p12 = scmp.ne.s32.totalorder %s1399_s26, 0 }
  0x6a   : > { %511 = vmatprep.subr.bf16.mxu0 %v899_v11  ;;  %554 = vmatprep.subr.bf16.mxu1 %v902_v13  ;;  %p1013_p7 = scmp.ne.s32.totalorder %s1327_s12, %s1012_s10  ;;  %s1112_s5 = smov [#allocation9]  }
  0x6b   : > { %s1016_s8 = sshll.u32 %s1112_s5, 4  ;;  %s1017_s8 = int_to_ptr.vmem [resolvable:$false] %s1016_s8 }
  0x6c   : > { %770 = vmatmul.mubr.msk.bf16.vlgmr.msra.gmra.mxu0 %vm372_vm0, %v896_v9  ;;  %771 = vmatmul.mubr.msk.bf16.vlgmr.msra.gmra.mxu1 %vm372_vm0, %v896_v9  ;;  %p1014_p2 = pnand %p1013_p7, %p1417_p12  ;;  %s1018_s11 = scalar_lea.vmem %s1017_s8, 2048 }
  0x6d   : > { %512 = vmatpush1.bf16.msra.mxu0 %v897_v10  ;;  %555 = vmatpush1.bf16.msra.mxu1 %v900_v12  ;;  %p1019_p5 = scmp.lt.s32.totalorder %s1327_s12, %s1017_s8  ;;  %p1020_p3 = scmp.lt.s32.totalorder %s1018_s11, %s1012_s10 }
  0x6e   : > { %529 = vmatprep.mubr.bf16.mxu0 %v1111_v0  ;;  %572 = vmatprep.mubr.bf16.mxu1 %v1111_v0  ;;  %s1332_s30 = scalar_lea.hbm %s1416_s22, %s786_s24  ;;  %p1015_p10 = pneg %p1014_p2 }
  0x6f   : > { %p1021_p9 = por %p1020_p3, %p1019_p5 }
  0x71   : > { %p1022_p4 = pnand %p1021_p9, %p1015_p10 }
  0x74   : > { %777 = vmatmul.mubr.msk.bf16.vlgmr.msra.gmra.mxu0 %vm493_vm1, %v903_v14  ;;  %778 = vmatmul.mubr.msk.bf16.vlgmr.msra.gmra.mxu1 %vm493_vm1, %v903_v14 }
 0x12c   : > { %v410_v15 = vpop.f32.mrf.mxu0  ;;  %v453_v16 = vpop.f32.mrf.mxu1 }
 0x12e   : > { %v412_v17 = vpop.f32.mrf.mxu0  ;;  %v455_v18 = vpop.f32.mrf.mxu1 }
 0x130   : > { %v414_v19 = vpop.f32.mrf.mxu0  ;;  %v457_v20 = vpop.f32.mrf.mxu1 }
 0x132   : > { %v416_v21 = vpop.f32.mrf.mxu0  ;;  %v459_v22 = vpop.f32.mrf.mxu1 }
 0x134   : > { %v531_v23 = vpop.f32.mrf.mxu0  ;;  %v574_v24 = vpop.f32.mrf.mxu1 }
 0x135   : > { %v583_v25 = vmul.f32 %v531_v23, %v410_v15  ;;  %v585_v26 = vmul.f32 %v574_v24, %v453_v16 }
 0x136   : > { %v533_v27 = vpop.f32.mrf.mxu0  ;;  %v576_v28 = vpop.f32.mrf.mxu1 }
 0x137   : > { %591 = vst [vmem:[%s309_s14] sm:$0xff] %v583_v25  ;;  %593 = vst [vmem:[%s309_s14 + $0x10] sm:$0xff] %v585_v26  ;;  %v584_v29 = vmul.f32 %v533_v27, %v412_v17  ;;  %v586_v30 = vmul.f32 %v576_v28, %v455_v18 }
 0x138   : > { %v535_v31 = vpop.f32.mrf.mxu0  ;;  %v578_v32 = vpop.f32.mrf.mxu1 }
 0x139   : > { %592 = vst [vmem:[%s309_s14 + $0x8] sm:$0xff] %v584_v29  ;;  %594 = vst [vmem:[%s309_s14 + $0x18] sm:$0xff] %v586_v30  ;;  %v587_v33 = vmul.f32 %v535_v31, %v414_v19  ;;  %v589_v34 = vmul.f32 %v578_v32, %v457_v20 }
 0x13a   : > { %v537_v35 = vpop.f32.mrf.mxu0  ;;  %v580_v36 = vpop.f32.mrf.mxu1 }
 0x13b   : > { %595 = vst [vmem:[%s309_s14 + $0x20] sm:$0xff] %v587_v33  ;;  %597 = vst [vmem:[%s309_s14 + $0x30] sm:$0xff] %v589_v34  ;;  %v588_v37 = vmul.f32 %v537_v35, %v416_v21  ;;  %v590_v38 = vmul.f32 %v580_v36, %v459_v22 }
 0x13d   : > { %596 = vst [vmem:[%s309_s14 + $0x28] sm:$0xff] %v588_v37  ;;  %598 = vst [vmem:[%s309_s14 + $0x38] sm:$0xff] %v590_v38 }
 0x13e   : > { %1025 = shalt.err (!%p1022_p4)
}
 0x13f   : > { %s1026_s9 = scalar_lea.hbm %s1332_s30, 1024  ;;  %s1030_s28 = scalar_lea.hbm %s1416_s22, 2048 }
 0x140   : > { %p1027_p0 = scmp.ne.s32.totalorder %s1332_s30, %s1026_s9  ;;  %p1031_p6 = scmp.lt.s32.totalorder %s1332_s30, %s1416_s22 }
 0x141   : > { %p1032_p11 = scmp.lt.s32.totalorder %s1030_s28, %s1026_s9 }
 0x142   : > { %p1028_p1 = pnand %p1027_p0, %p1417_p12 }
 0x143   : > { %p1033_p13 = por %p1032_p11, %p1031_p6 }
 0x144   : > { %p1029_p8 = pneg %p1028_p1 }
 0x146   : > { %p1034_p7 = pnand %p1033_p13, %p1029_p8 }
 0x148   : > { %1037 = shalt.err (!%p1034_p7)
}
 0x149   : > { %s1113_s21 = smov 512   ;;  %s1114_s25 = smov 1024  }
 0x14a   : > { %s1115_s14 = smov 32  }
 0x14b   : > { %799 = dma.vmem_to_hbm [thread:$0]  (%p1417_p12), %s1327_s12, 1024, %s1332_s30, %s600_s18, %s1113_s21, %s1114_s25, %s1115_s14  }
 0x14c PF: > { %s1418_s24 = sld [smem:[#allocation14_spill]]  ;;  %p1421_p10 = scmp.ge.s32.totalorder %s1100_s20, 2 }
 0x14d   : > { %s1419_s27 = sld [smem:[#allocation15_spill]] }
 0x152   : > { %s631_s15 = sand.u32 1, %s1418_s24  }
 0x153   : > { %p1420_p2 = scmp.ne.s32.totalorder %s1419_s27, 0  ;;  %s632_s10 = scalar_lea.sflag [#allocation4], %s631_s15 }
 0x155   : > { %p816_p5 = pnand %p1421_p10, %p1420_p2 }
 0x157   : > { %p817_p3 = pneg %p816_p5 }
 0x159   : > { %1075 = dma.done.wait (%p817_p3), %s632_s10, 1024  }
 0x15a   : > { %1077 = vsyncadd (%p817_p3), %s632_s10, 4294966272  ;;  %s19_s20 = sadd.s32 1, %s1100_s20   ;;  %s1422_s15 = smov %s1084_s16 }
 0x15b   : > { %p16_p9 = scmp.ge.s32.totalorder %s19_s20, 4   ;;  %s1423_s16 = smov %s1088_s17 }
 0x15c   : > { %s1424_s17 = smov %s1255_s4  ;;  %s1425_s18 = smov %s1096_s19 }
 0x15d   : > { %s1426_s19 = smov %s1428_s7  ;;  %18 = sbr.rel (!%p16_p9) target bundleno = 9 (0x9), region = 101 }
 0x162   :  { %637 = vsyncpa [#allocation3], 1 }
 0x163   :  { %639 = vsyncpa [#allocation3 + $0x1], 1 }
 0x164   :  { %640 = vsyncpa [#allocation6], 1 }
 0x165   :  { %641 = vsyncpa [#allocation4], 1 }
 0x166   :  { %643 = vsyncpa [#allocation4 + $0x1], 1 }

</bundles_post_ra>
